<compile_context>
chip_gen: v6e
topology: v6e:2x2x1
jax: 0.10.0
libtpu: 0.0.40
codegen_flags: <defaults>
</compile_context>

<pallas_src>
import math

import jax
import jax.numpy as jnp
from jax.experimental import pallas as pl
from jax.experimental.pallas import tpu as pltpu


def rotary_kernel(t_ref, cos_ref, sin_ref, o_ref):
    # t_ref/o_ref: (TN, TC);  cos_ref/sin_ref: (1, TC) row-broadcast, f32.
    #   out[j] = x[j]*cos[j] + rot[j]*signed_sin[j]
    #   rot[j] = x[j+1] for even j, x[j-1] for odd j
    #   signed_sin[j] = -sin(freq) on even lanes, +sin(freq) on odd lanes
    # Roll wrap values at the tile boundary are always discarded by the parity
    # select because TC is even (tile boundaries are pair-aligned).
    tc = t_ref.shape[1]
    x = t_ref[...].astype(jnp.float32)
    x_next = pltpu.roll(x, shift=tc - 1, axis=1)   # == roll(-1): x[j+1]
    x_prev = pltpu.roll(x, shift=1, axis=1)        # x[j-1]
    lane = jax.lax.broadcasted_iota(jnp.int32, x.shape, 1)
    rot = jnp.where((lane & 1) == 0, x_next, x_prev)
    out = x * cos_ref[...] + rot * sin_ref[...]
    o_ref[...] = out.astype(o_ref.dtype)


def _pick_block(total, base, cap):
    """Largest multiple of `base` that divides `total` and is <= cap.
    Falls back to the full extent (always a legal block size)."""
    if total <= cap:
        return total
    if total % base != 0:
        return total
    best = base
    d = base
    while d <= cap:
        if total % d == 0:
            best = d
        d += base
    return best


def _apply_rotary_pallas(t, cos_row, sin_row, *,
                         target_tile_bytes=4 * 1024 * 1024,
                         donate_input=False):
    *lead, S, D = t.shape
    N = math.prod(lead) if lead else 1
    C = S * D
    tf = t.reshape(N, C)
    itemsize = jnp.dtype(tf.dtype).itemsize

    # Lane-dense tiling: TC multiple of 128 (even, so rotary pairs never split
    # across tiles); TN sized so one input tile is ~target_tile_bytes.
    TC = _pick_block(C, 128, cap=8192)
    row_cap = max(8, target_tile_bytes // max(1, TC * itemsize))
    TN = _pick_block(N, 8, cap=row_cap)

    # v7x megacore: avoid collapsing to a single grid step when a legal split
    # exists, so both TensorCores get a "parallel" slice of the grid.
    if (N // TN) * (C // TC) == 1:
        if N % 16 == 0:
            TN = N // 2          # multiple of 8, divides N
        elif C % 256 == 0:
            TC = C // 2          # multiple of 128, even, divides C

    # Column axis OUTER / row axis INNER: the (1, TC) coefficient blocks keep a
    # constant block index across the inner loop -> no per-step re-DMA.
    grid = (C // TC, N // TN)

    # VMEM budget from the actual footprint (double-buffered in + out + coefs),
    # clamped to 64 MiB so it stays legal on v7x's smaller physical VMEM.
    tile_bytes = TN * TC * itemsize
    coef_bytes = 2 * TC * 4
    needed = 4 * tile_bytes + 4 * coef_bytes + (2 << 20)
    vmem_limit = int(min(64 * 1024 * 1024, max(32 * 1024 * 1024, needed)))

    out = pl.pallas_call(
        rotary_kernel,
        out_shape=jax.ShapeDtypeStruct((N, C), t.dtype),
        grid=grid,
        in_specs=[
            pl.BlockSpec((TN, TC), lambda j, i: (i, j)),
            pl.BlockSpec((1, TC), lambda j, i: (0, j)),
            pl.BlockSpec((1, TC), lambda j, i: (0, j)),
        ],
        out_specs=pl.BlockSpec((TN, TC), lambda j, i: (i, j)),
        compiler_params=pltpu.CompilerParams(
            dimension_semantics=("parallel", "parallel"),
            vmem_limit_bytes=vmem_limit,
        ),
        input_output_aliases=({0: 0} if donate_input else {}),
    )(tf, cos_row, sin_row)
    return out.reshape(*lead, S, D)


class RotaryEmbedding:
    """JAX/Pallas mirror of the PyTorch RotaryEmbedding module."""

    def __init__(self, dim, custom_freqs=None, freqs_for='lang', theta=10000.0,
                 max_freq=10, num_freqs=1):
        if custom_freqs is not None:
            freqs = jnp.asarray(custom_freqs, dtype=jnp.float32)
        elif freqs_for == 'lang':
            freqs = 1.0 / (theta ** (jnp.arange(0, dim, 2, dtype=jnp.float32)[: dim // 2] / dim))
        elif freqs_for == 'pixel':
            freqs = jnp.linspace(1.0, max_freq / 2, dim // 2, dtype=jnp.float32) * math.pi
        elif freqs_for == 'constant':
            freqs = jnp.ones((num_freqs,), dtype=jnp.float32)
        else:
            raise ValueError(f'unknown modality {freqs_for}')
        # TODO(synk): learned_freq=True (trainable freqs) not supported; tables
        # are cached like the non-learned register_buffer path.
        self.freqs = freqs
        self.cache = {}  # (seq_len, head_dim) -> (cos_row, signed_sin_row), each (1, S*D) f32

    def _tables(self, seq_len, head_dim):
        key = (int(seq_len), int(head_dim))
        if key in self.cache:
            return self.cache[key]
        # forward(): freqs = einsum('..., f -> ... f', arange(S), freqs);
        #            repeat '... n -> ... (n r)', r=2.  All in f32.
        pos = jnp.arange(seq_len, dtype=jnp.float32)
        fr = jnp.repeat(pos[:, None] * self.freqs[None, :], 2, axis=-1)
        fr = fr.reshape(1, seq_len * head_dim)
        cos = jnp.cos(fr)
        sin = jnp.sin(fr)
        lane = jax.lax.broadcasted_iota(jnp.int32, fr.shape, 1)
        signed_sin = jnp.where((lane & 1) == 0, -sin, sin)
        tabs = (cos, signed_sin)
        self.cache[key] = tabs
        return tabs

    def rotate_queries_or_keys(self, t, seq_dim=-2, *, donate_input=False):
        assert seq_dim in (-2, t.ndim - 2), "only seq_dim=-2 is supported"
        *_, S, D = t.shape
        # TODO(synk): partial rotation (start_index > 0 / rot_dim < D) not implemented.
        assert D == 2 * self.freqs.shape[0], "full-dim rotation expected"
        assert D % 2 == 0
        cos_row, sin_row = self._tables(S, D)
        return _apply_rotary_pallas(t, cos_row, sin_row, donate_input=donate_input)


def _reference(t, freqs_base):
    # pure-JAX mirror of apply_rotary_emb / rotate_half (f32 math)
    *_, S, D = t.shape
    pos = jnp.arange(S, dtype=jnp.float32)
    fr = jnp.repeat(pos[:, None] * freqs_base.astype(jnp.float32)[None, :], 2, axis=-1)
    tf = t.astype(jnp.float32)
    x = tf.reshape(*t.shape[:-1], D // 2, 2)
    x1, x2 = x[..., 0], x[..., 1]
    rot = jnp.stack([-x2, x1], axis=-1).reshape(t.shape)
    return (tf * jnp.cos(fr) + rot * jnp.sin(fr)).astype(t.dtype)


if __name__ == "__main__":
    key = jax.random.PRNGKey(0)
    k1, k2 = jax.random.split(key)

    # small shape from the module: (batch, heads, seq, head_dim)
    B, H, S, D = 2, 4, 8, 32
    rope = RotaryEmbedding(D)
    t = jax.random.normal(k1, (B, H, S, D), dtype=jnp.float32)
    out = jax.block_until_ready(rope.rotate_queries_or_keys(t))
    ref = _reference(t, rope.freqs)
    assert out.shape == t.shape and out.dtype == t.dtype
    assert jnp.allclose(out, ref, atol=1e-5, rtol=1e-5)

    # second call with the same seq_len hits the per-module table cache
    out_b = jax.block_until_ready(rope.rotate_queries_or_keys(t))
    assert jnp.allclose(out_b, ref, atol=1e-5, rtol=1e-5)

    # second shape exercises multi-tile columns (S*D > 8192), the swapped grid
    # order, and the tile-boundary wrap handling of the two rolls
    B2, H2, S2, D2 = 2, 2, 256, 64
    rope2 = RotaryEmbedding(D2)
    t2 = jax.random.normal(k2, (B2, H2, S2, D2), dtype=jnp.float32)
    out2 = jax.block_until_ready(rope2.rotate_queries_or_keys(t2))
    ref2 = _reference(t2, rope2.freqs)
    assert out2.shape == t2.shape and out2.dtype == t2.dtype
    assert jnp.allclose(out2, ref2, atol=1e-4, rtol=1e-4)

    # bf16 inputs: kernel math stays f32, cast only at the final store
    t3 = t.astype(jnp.bfloat16)
    out3 = jax.block_until_ready(rope.rotate_queries_or_keys(t3))
    ref3 = _reference(t3, rope.freqs)
    assert out3.dtype == jnp.bfloat16
    assert jnp.allclose(out3.astype(jnp.float32), ref3.astype(jnp.float32), atol=2e-2)

    print("KERNEL_OK")
</pallas_src>

<mosaic_0001>
module attributes {stable_mosaic.version = 11 : i64} {
  func.func @rotary_kernel(%arg0: i32, %arg1: i32, %arg2: memref<8x128xf32, #tpu.memory_space<vmem>>, %arg3: memref<1x128xf32, #tpu.memory_space<vmem>>, %arg4: memref<1x128xf32, #tpu.memory_space<vmem>>, %arg5: memref<8x128xf32, #tpu.memory_space<vmem>>) attributes {dimension_semantics = [#tpu.dimension_semantics<parallel>, #tpu.dimension_semantics<parallel>], iteration_bounds = array<i64: 2, 1>, scalar_prefetch = 0 : i64, scratch_operands = 0 : i64, tpu.core_type = #tpu.core_type<tc>, window_params = [{transform_indices = @transform_0, window_bounds = array<i64: 8, 128>}, {transform_indices = @transform_1, window_bounds = array<i64: 1, 128>}, {transform_indices = @transform_2, window_bounds = array<i64: 1, 128>}, {transform_indices = @transform_3, window_bounds = array<i64: 8, 128>}]} {
    %c0 = arith.constant 0 : index
    %c0_0 = arith.constant 0 : index
    %0 = vector.load %arg2[%c0, %c0_0] : memref<8x128xf32, #tpu.memory_space<vmem>>, vector<8x128xf32>
    %c127_i32 = arith.constant 127 : i32
    %1 = tpu.dynamic_rotate %0 by %c127_i32 dim 1 : vector<8x128xf32>, i32 -> vector<8x128xf32>
    %c1_i32 = arith.constant 1 : i32
    %2 = tpu.dynamic_rotate %0 by %c1_i32 dim 1 : vector<8x128xf32>, i32 -> vector<8x128xf32>
    %3 = tpu.iota {dimensions = array<i32: 1>} : vector<8x128xi32>
    %c1_i32_1 = arith.constant 1 : i32
    %4 = vector.broadcast %c1_i32_1 : i32 to vector<8x128xi32>
    %5 = arith.andi %3, %4 : vector<8x128xi32>
    %c0_i32 = arith.constant 0 : i32
    %6 = vector.broadcast %c0_i32 : i32 to vector<8x128xi32>
    %7 = arith.cmpi eq, %5, %6 : vector<8x128xi32>
    %8 = arith.select %7, %1, %2 : vector<8x128xi1>, vector<8x128xf32>
    %c0_2 = arith.constant 0 : index
    %c0_3 = arith.constant 0 : index
    %9 = vector.load %arg3[%c0_2, %c0_3] : memref<1x128xf32, #tpu.memory_space<vmem>>, vector<1x128xf32>
    %10 = vector.broadcast %9 : vector<1x128xf32> to vector<8x128xf32>
    %11 = arith.mulf %0, %10 : vector<8x128xf32>
    %c0_4 = arith.constant 0 : index
    %c0_5 = arith.constant 0 : index
    %12 = vector.load %arg4[%c0_4, %c0_5] : memref<1x128xf32, #tpu.memory_space<vmem>>, vector<1x128xf32>
    %13 = vector.broadcast %12 : vector<1x128xf32> to vector<8x128xf32>
    %14 = arith.mulf %8, %13 : vector<8x128xf32>
    %15 = arith.addf %11, %14 : vector<8x128xf32>
    %c0_6 = arith.constant 0 : index
    %c0_7 = arith.constant 0 : index
    %16 = vector.load %arg5[%c0_6, %c0_7] : memref<8x128xf32, #tpu.memory_space<vmem>>, vector<8x128xf32>
    tpu.vector_store %arg5[%c0_6, %c0_7], %15 {strides = array<i32>} : memref<8x128xf32, #tpu.memory_space<vmem>>, vector<8x128xf32>,
    return
  }
  func.func @transform_0(%arg0: i32, %arg1: i32) -> (i32, i32) {
    %c0_i32 = arith.constant 0 : i32
    return %arg1, %arg0 : i32, i32
  }
  func.func @transform_1(%arg0: i32, %arg1: i32) -> (i32, i32) {
    %c0_i32 = arith.constant 0 : i32
    %c0_i32_0 = arith.constant 0 : i32
    return %c0_i32, %arg0 : i32, i32
  }
  func.func @transform_2(%arg0: i32, %arg1: i32) -> (i32, i32) {
    %c0_i32 = arith.constant 0 : i32
    %c0_i32_0 = arith.constant 0 : i32
    return %c0_i32, %arg0 : i32, i32
  }
  func.func @transform_3(%arg0: i32, %arg1: i32) -> (i32, i32) {
    %c0_i32 = arith.constant 0 : i32
    return %arg1, %arg0 : i32, i32
  }
}

</mosaic_0001>

<bundles_post_ra>
// kernel: tpu_custom_call.1
= control target key start
LH: loop header
LB: loop body
LE: loop exit
PB: predicated region body
PF: predicated region fallthrough
CT: control target
= control target key end

     0   :  { %8 = vsyncpa [#allocation3], 0  ;;  %s828_s0 = inlined_call_operand.hbm [shape: f32[8,256], index: 0, kind: input, shape index: {}]   ;;  %s829_s1 = inlined_call_operand.hbm [shape: f32[1,256], index: 1, kind: input, shape index: {}]   ;;  %s830_s2 = inlined_call_operand.vmem [shape: f32[1,256], index: 2, kind: input, shape index: {}]   ;;  %s831_s3 = inlined_call_operand.hbm [shape: f32[8,256], index: 3, kind: output, shape index: {}]  }
   0x1   :  { %10 = vsyncpa [#allocation3 + $0x1], 0 }
   0x2   :  { %11 = vsyncpa [#allocation6], 0 }
   0x3   :  { %13 = vsyncpa [#allocation6 + $0x1], 0 }
   0x4   :  { %14 = vsyncpa [#allocation4], 0 }
   0x5   :  { %16 = vsyncpa [#allocation4 + $0x1], 0  ;;  %s659_s12 = smov 0   ;;  %s661_s13 = smov 0  }
   0x6   :  { %s663_s14 = smov 0   ;;  %s665_s15 = smov 0  }
   0x7   :  { %s667_s16 = smov 0   ;;  %s669_s17 = smov 0  }
   0x8 LB: > { %s407_s18 = sadd.s32 4294967295, %s632_s17   ;;  %s408_s19 = sadd.s32 4294967294, %s632_s17   ;;  %s632_s17 = sphi %s669_s17, %s22_s17   ;;  %s628_s16 = sphi %s667_s16, %s843_s16   ;;  %s624_s15 = sphi %s665_s15, %s842_s15   ;;  %s620_s14 = sphi %s663_s14, %s841_s14   ;;  %s616_s13 = sphi %s661_s13, %s840_s13   ;;  %s612_s12 = sphi %s659_s12, %s839_s12  }
   0x9   : > { %s34_s20 = sadd.s32 1, %s628_s16  ;;  %s43_s21 = sadd.s32 1, %s620_s14 }
   0xa   : > { %p36_p0 = scmp.ge.s32.totalorder %s34_s20, 2  ;;  %p50_p1 = scmp.ne.s32.totalorder %s620_s14, %s616_s13 }
   0xb   : > { %p51_p2 = scmp.eq.s32.totalorder %s632_s17, 0  ;;  %p56_p3 = scmp.ne.s32.totalorder %s616_s13, %s612_s12 }
   0xc   : > { %s845_s20 = smov (%p36_p0, %s34_s20), 0  ;;  %p57_p5 = scmp.eq.s32.totalorder %s407_s18, 0 }
   0xd   : > { %p700_p4 = por %p51_p2, %p50_p1  ;;  %s39_s23 = ssub.s32 %s628_s16, %s845_s20 }
   0xe   : > { %p134_p6 = scmp.eq.s32.totalorder %s407_s18, 1  ;;  %p41_p7 = scmp.eq.s32.totalorder %s39_s23, 0 }
   0xf   : > { %p706_p8 = por %p57_p5, %p56_p3  ;;  %p140_p10 = scmp.eq.s32.totalorder %s408_s19, 1 }
  0x10   : > { %p710_p9 = por %p134_p6, %p50_p1  ;;  %p440_p13 = scmp.lt.s32.totalorder %s632_s17, 2 }
  0x11   : > { %s715_s26 = scalar_select %p41_p7, %s620_s14, %s43_s21  }
  0x12   : > { %p717_p11 = por %p140_p10, %p56_p3  ;;  %s724_s28 = sand.u32 1, %s620_s14  }
  0x13   : > { %s411_s29 = sshll.u32 %s724_s28, 3  ;;  %s412_s30 = sshll.u32 %s628_s16, 7 }
  0x14   : > { %s171_s6 = scalar_lea.hbm %s828_s0, %s412_s30  ;;  %s164_s7 = scalar_lea.vmem [#allocation2], %s411_s29 }
  0x15   : > { %s173_s8 = sshll.u32 %s164_s7, 4  ;;  %p733_p0 = pnand %p440_p13, %p700_p4  ;;  %s174_s8 = int_to_ptr.vmem [resolvable:$true] %s173_s8 }
  0x16   : > { %p414_p1 = scmp.ge.s32.totalorder %s632_s17, 1  ;;  %p201_p2 = scmp.lt.s32.totalorder %s632_s17, 3 }
  0x17   : > { %s161_s10 = scalar_lea.sflag [#allocation3], %s724_s28  ;;  %p494_p3 = pneg %p733_p0 }
  0x18   : > { %s505_s11 = scalar_lea.vmem %s174_s8, 128  ;;  %s634_s18 = smov [#allocation2]  }
  0x19   : > { %p506_p5 = scmp.ne.s32.totalorder %s174_s8, %s505_s11  ;;  %s510_s19 = sshll.u32 %s634_s18, 4  ;;  %s511_s19 = int_to_ptr.vmem [resolvable:$false] %s510_s19 }
  0x1a   : > { %s512_s21 = scalar_lea.vmem %s511_s19, 256  ;;  %p513_p4 = scmp.lt.s32.totalorder %s174_s8, %s511_s19 }
  0x1b   : > { %p508_p6 = pnand %p506_p5, %p494_p3  ;;  %p514_p10 = scmp.lt.s32.totalorder %s512_s21, %s505_s11 }
  0x1d   : > { %p509_p7 = pneg %p508_p6  ;;  %p515_p13 = por %p514_p10, %p513_p4 }
  0x1f   : > { %p516_p12 = pnand %p515_p13, %p509_p7 }
  0x21   : > { %519 = shalt.err (!%p516_p12)
}
  0x22   : > { %432 = dma.hbm_to_vmem [thread:$0]  (!%p733_p0), %s171_s6, 128, %s174_s8, %s161_s10  }
  0x23   : > { %p751_p5 = pnand %p414_p1, %p201_p2  ;;  %s413_s23 = sshll.u32 %s628_s16, 4 }
  0x24   : > { %s183_s29 = scalar_lea.vmem [#allocation5], %s724_s28  ;;  %s188_s7 = scalar_lea.hbm %s829_s1, %s413_s23 }
  0x25   : > { %s190_s30 = sshll.u32 %s183_s29, 4  ;;  %s181_s11 = scalar_lea.sflag [#allocation6], %s724_s28  ;;  %s191_s30 = int_to_ptr.vmem [resolvable:$true] %s190_s30 }
  0x26   : > { %s533_s18 = scalar_lea.vmem %s191_s30, 16  ;;  %s635_s6 = smov [#allocation5]  }
  0x27   : > { %p534_p12 = scmp.ne.s32.totalorder %s191_s30, %s533_s18  ;;  %s538_s8 = sshll.u32 %s635_s6, 4  ;;  %s539_s8 = int_to_ptr.vmem [resolvable:$false] %s538_s8 }
  0x28   : > { %s540_s10 = scalar_lea.vmem %s539_s8, 32  ;;  %p541_p1 = scmp.lt.s32.totalorder %s191_s30, %s539_s8 }
  0x29   : > { %p536_p6 = pnand %p534_p12, %p494_p3  ;;  %p542_p2 = scmp.lt.s32.totalorder %s540_s10, %s533_s18 }
  0x2b   : > { %p537_p7 = pneg %p536_p6  ;;  %p543_p4 = por %p542_p2, %p541_p1 }
  0x2d   : > { %p544_p10 = pnand %p543_p4, %p537_p7 }
  0x2f   : > { %547 = shalt.err (!%p544_p10)
}
  0x30   : > { %435 = dma.hbm_to_vmem [thread:$0]  (!%p733_p0), %s188_s7, 16, %s191_s30, %s181_s11  }
  0x31   : > { %205 = sbr.rel (%p751_p5) target bundleno = 195 (0xc3), region = 32  ;;  %s769_s28 = sand.u32 (!%p751_p5), 1, %s616_s13  }
  0x32   : > { %s415_s19 = sshll.u32 (!%p751_p5), %s769_s28, 3  ;;  %s208_s21 = scalar_lea.sflag (!%p751_p5), [#allocation3], %s769_s28 }
  0x33   : > { %s211_s23 = scalar_lea.vmem (!%p751_p5), [#allocation2], %s415_s19 }
  0x36   : > { %599 = dma.done.wait (%p706_p8), %s208_s21, 128  }
  0x37   : > { %601 = vsyncadd (%p706_p8), %s208_s21, 4294967168  ;;  %s217_s9 = scalar_lea.sflag [#allocation6], %s769_s28  ;;  %s219_s22 = scalar_lea.vmem [#allocation5], %s769_s28 }
  0x38   : > { %603 = dma.done.wait (%p706_p8), %s217_s9, 16  }
  0x39   : > { %605 = vsyncadd (%p706_p8), %s217_s9, 4294967280  ;;  %v252_v0 = vld [vmem:[%s211_s23] sm:$0xff]  ;;  %s636_s29 = smov 127   ;;  %s637_s30 = smov 1   ;;  %v257_v1 = vlaneseq }
  0x3a   : > { %253 = vrot.lane.b32.xlu0 %v252_v0, %s636_s29  ;;  %p249_p0 = scmp.lt.s32.totalorder %s624_s15, 1  ;;  %v417_v5 = vld [vmem:[%s219_s22] ss:$0 sm:$0xff]  ;;  %s420_s11 = sshll.u32 %s624_s15, 7 }
  0x3b   : > { %v258_v2 = vand.u32 127, %v257_v1  ;;  %v269_v7 = vmul.f32 %v417_v5, %v252_v0  ;;  %s248_s18 = scalar_lea.vmem [#allocation7], %s415_s19  ;;  %s294_s21 = scalar_lea.hbm %s831_s3, %s420_s11 }
  0x3c   : > { %s250_s4 = scalar_select %p249_p0, %s624_s15, 1 }
  0x3d   : > { %v259_v3 = vand.u32 1, %v258_v2  ;;  %s296_s6 = sshll.u32 %s248_s18, 4  ;;  %s281_s23 = scalar_lea.sflag [#allocation4], %s769_s28  ;;  %s297_s6 = int_to_ptr.vmem [resolvable:$true] %s296_s6 }
  0x3e   : > { %255 = vrot.lane.b32.xlu0 %v252_v0, %s637_s30  ;;  %s251_s24 = scalar_lea.vmem %s830_s2, %s250_s4  ;;  %s548_s9 = scalar_lea.vmem %s297_s6, 128 }
  0x3f   : > { %vm260_vm0 = vcmp.eq.s32.totalorder %v259_v3, 0  ;;  %v418_v6 = vld [vmem:[%s251_s24] ss:$0 sm:$0xff]  ;;  %p549_p8 = scmp.ne.s32.totalorder %s297_s6, %s548_s9  ;;  %s638_s22 = smov [#allocation7]  }
  0x40   : > { %s552_s29 = sshll.u32 %s638_s22, 4  ;;  %s553_s29 = int_to_ptr.vmem [resolvable:$false] %s552_s29 }
  0x41   : > { %p550_p3 = pnand %p549_p8, %p710_p9  ;;  %s554_s15 = scalar_lea.vmem %s553_s29, 256 }
  0x42   : > { %p555_p5 = scmp.lt.s32.totalorder %s297_s6, %s553_s29  ;;  %p556_p12 = scmp.lt.s32.totalorder %s554_s15, %s548_s9 }
  0x43   : > { %p551_p13 = pneg %p550_p3 }
  0x44   : > { %p557_p6 = por %p556_p12, %p555_p5 }
  0x46   : > { %p558_p7 = pnand %p557_p6, %p551_p13 }
  0xac   : > { %v254_v4 = vpop.permute.xlu0 %253 }
  0xb0   : > { %v256_v8 = vpop.permute.xlu0 %255 }
  0xb1   : > { %v261_v9 = vsel %vm260_vm0, %v254_v4, %v256_v8 }
  0xb2   : > { %v277_v10 = vmul.f32 %v418_v6, %v261_v9 }
  0xb4   : > { %v278_v11 = vadd.f32 %v277_v10, %v269_v7 }
  0xb6   : > { %279 = vst [vmem:[%s248_s18] sm:$0xff] %v278_v11 }
  0xb7   : > { %561 = shalt.err (!%p558_p7)
}
  0xb8   : > { %s562_s19 = scalar_lea.hbm %s294_s21, 128  ;;  %s566_s4 = scalar_lea.hbm %s831_s3, 256 }
  0xb9   : > { %p563_p1 = scmp.ne.s32.totalorder %s294_s21, %s562_s19  ;;  %p567_p10 = scmp.lt.s32.totalorder %s294_s21, %s831_s3 }
  0xba   : > { %p568_p0 = scmp.lt.s32.totalorder %s566_s4, %s562_s19 }
  0xbb   : > { %p564_p2 = pnand %p563_p1, %p710_p9 }
  0xbc   : > { %p569_p8 = por %p568_p0, %p567_p10 }
  0xbd   : > { %p565_p4 = pneg %p564_p2 }
  0xbf   : > { %p570_p3 = pnand %p569_p8, %p565_p4 }
  0xc1   : > { %573 = shalt.err (!%p570_p3)
}
  0xc2   : > { %427 = dma.vmem_to_hbm [thread:$0]  (%p710_p9), %s297_s6, 128, %s294_s21, %s281_s23  }
  0xc3 PF: > { %s308_s24 = sand.u32 1, %s612_s12   ;;  %p838_p13 = scmp.ge.s32.totalorder %s632_s17, 2 }
  0xc4   : > { %s309_s11 = scalar_lea.sflag [#allocation4], %s308_s24 }
  0xc5   : > { %p437_p5 = pnand %p838_p13, %p717_p11 }
  0xc7   : > { %p438_p12 = pneg %p437_p5 }
  0xc9   : > { %607 = dma.done.wait (%p438_p12), %s309_s11, 128  }
  0xca   : > { %609 = vsyncadd (%p438_p12), %s309_s11, 4294967168  ;;  %s22_s17 = sadd.s32 1, %s632_s17   ;;  %s839_s12 = smov %s616_s13 }
  0xcb   : > { %p19_p6 = scmp.ge.s32.totalorder %s22_s17, 4   ;;  %s840_s13 = smov %s620_s14 }
  0xcc   : > { %s841_s14 = smov %s715_s26  ;;  %s842_s15 = smov %s628_s16 }
  0xcd   : > { %s843_s16 = smov %s845_s20  ;;  %21 = sbr.rel (!%p19_p6) target bundleno = 8 (0x8), region = 93 }
  0xd2   :  { %314 = vsyncpa [#allocation3], 1 }
  0xd3   :  { %316 = vsyncpa [#allocation3 + $0x1], 1 }
  0xd4   :  { %317 = vsyncpa [#allocation6], 1 }
  0xd5   :  { %319 = vsyncpa [#allocation6 + $0x1], 1 }
  0xd6   :  { %320 = vsyncpa [#allocation4], 1 }
  0xd7   :  { %322 = vsyncpa [#allocation4 + $0x1], 1 }

</bundles_post_ra>
